<compile_context>
chip_gen: v7x
topology: tpu7x:2x2x1
jax: 0.10.0
libtpu: 0.0.40
codegen_flags: <defaults>
</compile_context>

<pallas_src>
import jax
import jax.numpy as jnp
from jax.experimental import pallas as pl
from jax.experimental.pallas import tpu as pltpu


def linear_kernel(w_ref, b_ref, x_ref, o_ref):
    # w_ref: SMEM (3, 4)       f32  (out_features, in_features)
    # b_ref: SMEM (3,)         f32
    # x_ref: VMEM (4, 8, TL)   f32  feature-major, sublane-packed input tile
    # o_ref: VMEM (3, 8, TL)   f32  feature-major, sublane-packed output tile
    out_f, in_f = w_ref.shape

    # Each per-feature slab is a fully packed (8, TL) set of vregs.
    x_rows = [x_ref[k] for k in range(in_f)]

    # y[j] = b[j] + sum_k w[j, k] * x[k]   -- pure VPU broadcast FMAs.
    for j in range(out_f):
        acc = x_rows[0] * w_ref[j, 0] + b_ref[j]
        for k in range(1, in_f):
            acc = acc + x_rows[k] * w_ref[j, k]
        o_ref[j] = acc


def linear_feature_major(x_t, weight, bias, *, lane_tile=8192):
    """Native kernel contract (no transposes / pads / slices).

    x_t:    (in_f, N) f32, feature-major, N % 8 == 0
    weight: (out_f, in_f) f32
    bias:   (out_f,) f32
    returns (out_f, N) f32
    """
    in_f, n = x_t.shape
    out_f = weight.shape[0]
    assert n % 8 == 0, "feature-major Pallas path requires N % 8 == 0"

    lanes = n // 8
    # Free reshape of the contiguous feature-major rows: batch columns now fill
    # all 8 sublanes of every vreg the kernel touches.
    x3 = x_t.reshape(in_f, 8, lanes)

    # Lane tile: multiple of 128, clamped for small N and for VMEM budget
    # (double-buffered tiles must stay well under v7x's 32 MiB scoped VMEM).
    tl = min(lane_tile, 56 * 1024)
    tl = max(128, min(tl, pl.cdiv(lanes, 128) * 128))
    grid = (pl.cdiv(lanes, tl),)

    # Double-buffered input (4,8,tl) + output (3,8,tl) f32 tiles, plus margin.
    need = 2 * (in_f + out_f) * 8 * tl * 4
    vmem_limit = min(max(need + (4 << 20), 16 << 20), 32 << 20)

    out3 = pl.pallas_call(
        linear_kernel,
        out_shape=jax.ShapeDtypeStruct((out_f, 8, lanes), jnp.float32),
        grid=grid,
        in_specs=[
            # Tiny weight / bias: whole arrays in SMEM, read as scalars.
            pl.BlockSpec(memory_space=pltpu.MemorySpace.SMEM),
            pl.BlockSpec(memory_space=pltpu.MemorySpace.SMEM),
            # Input: sublane-packed (4, 8, TL) tile, pipelined over the lanes.
            pl.BlockSpec((in_f, 8, tl), lambda i: (0, 0, i)),
        ],
        out_specs=pl.BlockSpec((out_f, 8, tl), lambda i: (0, 0, i)),
        compiler_params=pltpu.CompilerParams(
            dimension_semantics=("parallel",),   # shard tiles across TCs (v7x)
            vmem_limit_bytes=vmem_limit,
        ),
        cost_estimate=pl.CostEstimate(
            flops=2 * in_f * out_f * n,
            transcendentals=0,
            bytes_accessed=4 * n * (in_f + out_f),
        ),
    )(weight.astype(jnp.float32), bias.astype(jnp.float32), x3)

    return out3.reshape(out_f, n)


def softmax_classifier_forward(x, weight, bias, *, lane_tile=8192,
                               min_pallas_batch=16384, force_pallas=False):
    """PyTorch-layout entry point: x (N, 4) f32 -> (N, 3) f32."""
    n = x.shape[0]
    use_pallas = (force_pallas or n >= min_pallas_batch) and (n % 8 == 0)
    if not use_pallas:
        # Small batches (or N % 8 != 0): a fused XLA GEMV beats the pallas_call
        # plus layout plumbing on every TPU generation.
        return (x.astype(jnp.float32) @ weight.astype(jnp.float32).T
                + bias.astype(jnp.float32))

    # Feature-major is the kernel's native contract; the single transpose pair
    # below exists only to honour the row-major PyTorch API of this test.
    # TODO(synk): at large N, feed feature-major activations directly /
    # fuse these transposes into the producer & consumer.
    x_t = x.astype(jnp.float32).T                     # (in_f, N)
    y_t = linear_feature_major(x_t, weight, bias, lane_tile=lane_tile)
    return y_t.T                                      # (N, out_f)


if __name__ == "__main__":
    key = jax.random.PRNGKey(0)
    kx, kw, kb = jax.random.split(key, 3)

    # N = 2000: multiple of 8 (Pallas path), and 2000//8 = 250 lanes is not a
    # multiple of 128, so with lane_tile=128 we exercise a 2-step grid with a
    # partial (masked) last block and no wrapper-side padding at all.
    batch, in_features, out_features = 2000, 4, 3

    # Parameter init mirroring nn.Linear's default: U(-1/sqrt(in), 1/sqrt(in)).
    bound = 1.0 / jnp.sqrt(jnp.float32(in_features))
    weight = jax.random.uniform(
        kw, (out_features, in_features), jnp.float32, -bound, bound
    )
    bias = jax.random.uniform(kb, (out_features,), jnp.float32, -bound, bound)
    x = jax.random.normal(kx, (batch, in_features), jnp.float32)

    out = softmax_classifier_forward(
        x, weight, bias, lane_tile=128, force_pallas=True
    )
    out = jax.block_until_ready(out)

    # Reference check against plain JAX.
    ref = x @ weight.T + bias
    assert out.shape == (batch, out_features)
    assert jnp.allclose(out, ref, atol=1e-5, rtol=1e-5)

    print("KERNEL_OK")
</pallas_src>

<mosaic_0001>
module attributes {stable_mosaic.version = 11 : i64} {
  func.func @linear_kernel(%arg0: i32, %arg1: memref<3x4xf32, #tpu.memory_space<smem>>, %arg2: memref<3xf32, #tpu.memory_space<smem>>, %arg3: memref<4x8x128xf32, #tpu.memory_space<vmem>>, %arg4: memref<3x8x128xf32, #tpu.memory_space<vmem>>) attributes {dimension_semantics = [#tpu.dimension_semantics<parallel>], iteration_bounds = array<i64: 2>, scalar_prefetch = 0 : i64, scratch_operands = 0 : i64, tpu.core_type = #tpu.core_type<tc>, window_params = [{transform_indices = @transform_0, window_bounds = array<i64: 3, 4>}, {transform_indices = @transform_1, window_bounds = array<i64: 3>}, {transform_indices = @transform_2, window_bounds = array<i64: 4, 8, 128>}, {transform_indices = @transform_3, window_bounds = array<i64: 3, 8, 128>}]} {
    %c0 = arith.constant 0 : index
    %c0_0 = arith.constant 0 : index
    %c0_1 = arith.constant 0 : index
    %0 = vector.load %arg3[%c0, %c0_0, %c0_1] : memref<4x8x128xf32, #tpu.memory_space<vmem>>, vector<1x8x128xf32>
    %1 = vector.shape_cast %0 : vector<1x8x128xf32> to vector<8x128xf32>
    %c1 = arith.constant 1 : index
    %c0_2 = arith.constant 0 : index
    %c0_3 = arith.constant 0 : index
    %2 = vector.load %arg3[%c1, %c0_2, %c0_3] : memref<4x8x128xf32, #tpu.memory_space<vmem>>, vector<1x8x128xf32>
    %3 = vector.shape_cast %2 : vector<1x8x128xf32> to vector<8x128xf32>
    %c2 = arith.constant 2 : index
    %c0_4 = arith.constant 0 : index
    %c0_5 = arith.constant 0 : index
    %4 = vector.load %arg3[%c2, %c0_4, %c0_5] : memref<4x8x128xf32, #tpu.memory_space<vmem>>, vector<1x8x128xf32>
    %5 = vector.shape_cast %4 : vector<1x8x128xf32> to vector<8x128xf32>
    %c3 = arith.constant 3 : index
    %c0_6 = arith.constant 0 : index
    %c0_7 = arith.constant 0 : index
    %6 = vector.load %arg3[%c3, %c0_6, %c0_7] : memref<4x8x128xf32, #tpu.memory_space<vmem>>, vector<1x8x128xf32>
    %7 = vector.shape_cast %6 : vector<1x8x128xf32> to vector<8x128xf32>
    %c0_8 = arith.constant 0 : index
    %c0_9 = arith.constant 0 : index
    %8 = memref.load %arg1[%c0_8, %c0_9] : memref<3x4xf32, #tpu.memory_space<smem>>
    %9 = vector.broadcast %8 : f32 to vector<8x128xf32>
    %10 = arith.mulf %1, %9 : vector<8x128xf32>
    %c0_10 = arith.constant 0 : index
    %11 = memref.load %arg2[%c0_10] : memref<3xf32, #tpu.memory_space<smem>>
    %12 = vector.broadcast %11 : f32 to vector<8x128xf32>
    %13 = arith.addf %10, %12 : vector<8x128xf32>
    %c0_11 = arith.constant 0 : index
    %c1_12 = arith.constant 1 : index
    %14 = memref.load %arg1[%c0_11, %c1_12] : memref<3x4xf32, #tpu.memory_space<smem>>
    %15 = vector.broadcast %14 : f32 to vector<8x128xf32>
    %16 = arith.mulf %3, %15 : vector<8x128xf32>
    %17 = arith.addf %13, %16 : vector<8x128xf32>
    %c0_13 = arith.constant 0 : index
    %c2_14 = arith.constant 2 : index
    %18 = memref.load %arg1[%c0_13, %c2_14] : memref<3x4xf32, #tpu.memory_space<smem>>
    %19 = vector.broadcast %18 : f32 to vector<8x128xf32>
    %20 = arith.mulf %5, %19 : vector<8x128xf32>
    %21 = arith.addf %17, %20 : vector<8x128xf32>
    %c0_15 = arith.constant 0 : index
    %c3_16 = arith.constant 3 : index
    %22 = memref.load %arg1[%c0_15, %c3_16] : memref<3x4xf32, #tpu.memory_space<smem>>
    %23 = vector.broadcast %22 : f32 to vector<8x128xf32>
    %24 = arith.mulf %7, %23 : vector<8x128xf32>
    %25 = arith.addf %21, %24 : vector<8x128xf32>
    %c0_17 = arith.constant 0 : index
    %c0_18 = arith.constant 0 : index
    %c0_19 = arith.constant 0 : index
    %26 = vector.load %arg4[%c0_17, %c0_18, %c0_19] : memref<3x8x128xf32, #tpu.memory_space<vmem>>, vector<1x8x128xf32>
    %27 = vector.shape_cast %26 : vector<1x8x128xf32> to vector<8x128xf32>
    %28 = vector.shape_cast %25 : vector<8x128xf32> to vector<1x8x128xf32>
    tpu.vector_store %arg4[%c0_17, %c0_18, %c0_19], %28 {strides = array<i32>} : memref<3x8x128xf32, #tpu.memory_space<vmem>>, vector<1x8x128xf32>,
    %c1_20 = arith.constant 1 : index
    %c0_21 = arith.constant 0 : index
    %29 = memref.load %arg1[%c1_20, %c0_21] : memref<3x4xf32, #tpu.memory_space<smem>>
    %30 = vector.broadcast %29 : f32 to vector<8x128xf32>
    %31 = arith.mulf %1, %30 : vector<8x128xf32>
    %c1_22 = arith.constant 1 : index
    %32 = memref.load %arg2[%c1_22] : memref<3xf32, #tpu.memory_space<smem>>
    %33 = vector.broadcast %32 : f32 to vector<8x128xf32>
    %34 = arith.addf %31, %33 : vector<8x128xf32>
    %c1_23 = arith.constant 1 : index
    %c1_24 = arith.constant 1 : index
    %35 = memref.load %arg1[%c1_23, %c1_24] : memref<3x4xf32, #tpu.memory_space<smem>>
    %36 = vector.broadcast %35 : f32 to vector<8x128xf32>
    %37 = arith.mulf %3, %36 : vector<8x128xf32>
    %38 = arith.addf %34, %37 : vector<8x128xf32>
    %c1_25 = arith.constant 1 : index
    %c2_26 = arith.constant 2 : index
    %39 = memref.load %arg1[%c1_25, %c2_26] : memref<3x4xf32, #tpu.memory_space<smem>>
    %40 = vector.broadcast %39 : f32 to vector<8x128xf32>
    %41 = arith.mulf %5, %40 : vector<8x128xf32>
    %42 = arith.addf %38, %41 : vector<8x128xf32>
    %c1_27 = arith.constant 1 : index
    %c3_28 = arith.constant 3 : index
    %43 = memref.load %arg1[%c1_27, %c3_28] : memref<3x4xf32, #tpu.memory_space<smem>>
    %44 = vector.broadcast %43 : f32 to vector<8x128xf32>
    %45 = arith.mulf %7, %44 : vector<8x128xf32>
    %46 = arith.addf %42, %45 : vector<8x128xf32>
    %c1_29 = arith.constant 1 : index
    %c0_30 = arith.constant 0 : index
    %c0_31 = arith.constant 0 : index
    %47 = vector.load %arg4[%c1_29, %c0_30, %c0_31] : memref<3x8x128xf32, #tpu.memory_space<vmem>>, vector<1x8x128xf32>
    %48 = vector.shape_cast %47 : vector<1x8x128xf32> to vector<8x128xf32>
    %49 = vector.shape_cast %46 : vector<8x128xf32> to vector<1x8x128xf32>
    tpu.vector_store %arg4[%c1_29, %c0_30, %c0_31], %49 {strides = array<i32>} : memref<3x8x128xf32, #tpu.memory_space<vmem>>, vector<1x8x128xf32>,
    %c2_32 = arith.constant 2 : index
    %c0_33 = arith.constant 0 : index
    %50 = memref.load %arg1[%c2_32, %c0_33] : memref<3x4xf32, #tpu.memory_space<smem>>
    %51 = vector.broadcast %50 : f32 to vector<8x128xf32>
    %52 = arith.mulf %1, %51 : vector<8x128xf32>
    %c2_34 = arith.constant 2 : index
    %53 = memref.load %arg2[%c2_34] : memref<3xf32, #tpu.memory_space<smem>>
    %54 = vector.broadcast %53 : f32 to vector<8x128xf32>
    %55 = arith.addf %52, %54 : vector<8x128xf32>
    %c2_35 = arith.constant 2 : index
    %c1_36 = arith.constant 1 : index
    %56 = memref.load %arg1[%c2_35, %c1_36] : memref<3x4xf32, #tpu.memory_space<smem>>
    %57 = vector.broadcast %56 : f32 to vector<8x128xf32>
    %58 = arith.mulf %3, %57 : vector<8x128xf32>
    %59 = arith.addf %55, %58 : vector<8x128xf32>
    %c2_37 = arith.constant 2 : index
    %c2_38 = arith.constant 2 : index
    %60 = memref.load %arg1[%c2_37, %c2_38] : memref<3x4xf32, #tpu.memory_space<smem>>
    %61 = vector.broadcast %60 : f32 to vector<8x128xf32>
    %62 = arith.mulf %5, %61 : vector<8x128xf32>
    %63 = arith.addf %59, %62 : vector<8x128xf32>
    %c2_39 = arith.constant 2 : index
    %c3_40 = arith.constant 3 : index
    %64 = memref.load %arg1[%c2_39, %c3_40] : memref<3x4xf32, #tpu.memory_space<smem>>
    %65 = vector.broadcast %64 : f32 to vector<8x128xf32>
    %66 = arith.mulf %7, %65 : vector<8x128xf32>
    %67 = arith.addf %63, %66 : vector<8x128xf32>
    %c2_41 = arith.constant 2 : index
    %c0_42 = arith.constant 0 : index
    %c0_43 = arith.constant 0 : index
    %68 = vector.load %arg4[%c2_41, %c0_42, %c0_43] : memref<3x8x128xf32, #tpu.memory_space<vmem>>, vector<1x8x128xf32>
    %69 = vector.shape_cast %68 : vector<1x8x128xf32> to vector<8x128xf32>
    %70 = vector.shape_cast %67 : vector<8x128xf32> to vector<1x8x128xf32>
    tpu.vector_store %arg4[%c2_41, %c0_42, %c0_43], %70 {strides = array<i32>} : memref<3x8x128xf32, #tpu.memory_space<vmem>>, vector<1x8x128xf32>,
    return
  }
  func.func @transform_0(%arg0: i32) -> (i32, i32) {
    %c0_i32 = arith.constant 0 : i32
    %c0_i32_0 = arith.constant 0 : i32
    %c0_i32_1 = arith.constant 0 : i32
    return %c0_i32, %c0_i32_0 : i32, i32
  }
  func.func @transform_1(%arg0: i32) -> i32 {
    %c0_i32 = arith.constant 0 : i32
    %c0_i32_0 = arith.constant 0 : i32
    return %c0_i32 : i32
  }
  func.func @transform_2(%arg0: i32) -> (i32, i32, i32) {
    %c0_i32 = arith.constant 0 : i32
    %c0_i32_0 = arith.constant 0 : i32
    %c0_i32_1 = arith.constant 0 : i32
    return %c0_i32, %c0_i32_0, %arg0 : i32, i32, i32
  }
  func.func @transform_3(%arg0: i32) -> (i32, i32, i32) {
    %c0_i32 = arith.constant 0 : i32
    %c0_i32_0 = arith.constant 0 : i32
    %c0_i32_1 = arith.constant 0 : i32
    return %c0_i32, %c0_i32_0, %arg0 : i32, i32, i32
  }
}

</mosaic_0001>

<bundles_post_ra>
// kernel: tpu_custom_call.1
= control target key start
LH: loop header
LB: loop body
LE: loop exit
PB: predicated region body
PF: predicated region fallthrough
CT: control target
= control target key end

     0   :  { %8 = vsyncpa [#allocation5], 0  ;;  %s879_s0 = inlined_call_operand.hbm [shape: f32[3,4], index: 0, kind: input, shape index: {}]   ;;  %s880_s1 = inlined_call_operand.vmem [shape: f32[3], index: 1, kind: input, shape index: {}]   ;;  %s881_s2 = inlined_call_operand.hbm [shape: f32[4,8,250], index: 2, kind: input, shape index: {}]   ;;  %s882_s3 = inlined_call_operand.hbm [shape: f32[3,8,250], index: 3, kind: output, shape index: {}]  }
   0x1   :  { %9 = vsyncpa [#allocation6], 0 }
   0x2   :  { %10 = vsyncpa [#allocation3], 0 }
   0x3   :  { %12 = vsyncpa [#allocation3 + $0x1], 0 }
   0x4   :  { %13 = vsyncpa [#allocation4], 0 }
   0x5   :  { %15 = vsyncpa [#allocation4 + $0x1], 0  ;;  %s659_s12 = smov 0   ;;  %s661_s13 = smov 0  }
   0x6   :  { %s663_s14 = smov 0   ;;  %s665_s15 = smov 0  }
   0x7 LB: > { %s680_s16 = sadd.s32 4294967295, %s627_s15   ;;  %s389_s17 = sadd.s32 4294967294, %s627_s15   ;;  %s627_s15 = sphi %s665_s15, %s905_s15   ;;  %s623_s14 = sphi %s663_s14, %s904_s14   ;;  %s619_s13 = sphi %s661_s13, %s903_s13   ;;  %s615_s12 = sphi %s659_s12, %s902_s12  }
   0x8   : > { %s684_s18 = sadd.s32 1, %s627_s15   ;;  %s70_s19 = sadd.s32 1, %s623_s14 }
   0x9   : > { %s67_s20 = ssub.s32 %s627_s15, %s684_s18  ;;  %p77_p0 = scmp.ne.s32.totalorder %s623_s14, %s619_s13 }
   0xa   : > { %p68_p1 = scmp.eq.s32.totalorder %s67_s20, 0  ;;  %p78_p2 = scmp.eq.s32.totalorder %s627_s15, 0 }
   0xb   : > { %p83_p3 = scmp.ne.s32.totalorder %s619_s13, %s615_s12  ;;  %p883_p4 = scmp.eq.s32.totalorder %s680_s16, 0 }
   0xc   : > { %s696_s21 = scalar_select %p68_p1, %s623_s14, %s70_s19  }
   0xd   : > { %p698_p5 = por %p78_p2, %p77_p0  ;;  %p704_p6 = por %p883_p4, %p83_p3 }
   0xe   : > { %p107_p7 = scmp.eq.s32.totalorder %s680_s16, 1  ;;  %p113_p8 = scmp.eq.s32.totalorder %s389_s17, 1 }
   0xf   : > { %s887_s23 = scalar_select %p704_p6, 1, 0 }
  0x10   : > { %p390_p9 = scmp.ge.s32.totalorder %s627_s15, 1  ;;  %p120_p10 = scmp.lt.s32.totalorder %s627_s15, 3 }
  0x11   : > { %p711_p11 = por %p107_p7, %p77_p0  ;;  %p715_p12 = por %p113_p8, %p83_p3 }
  0x12   : > { %p719_p13 = pnand %p390_p9, %p120_p10  ;;  %p451_p4 = scmp.lt.s32.totalorder %s627_s15, 2 }
  0x13   : > { %s888_s24 = scalar_select %p711_p11, 1, 0 }
  0x14   : > { %s889_s25 = scalar_select %p715_p12, 1, 0 }
  0x15   : > { %p434_p2 = pneg %p719_p13  ;;  %s142_s29 = sshll.u32 %s880_s1, 4  ;;  %s143_s29 = int_to_ptr.vmem [resolvable:$true] %s142_s29 }
  0x16   : > { %p891_p0 = scmp.eq.s32.totalorder %s680_s16, 0  ;;  %p738_p3 = pnand %p451_p4, %p698_p5 }
  0x17   : > { %s153_s5 = sand.u32 1, %s623_s14   ;;  %s495_s8 = scalar_lea.hbm %s879_s0, 64 }
  0x18   : > { %p732_p7 = pnand %p434_p2, %p891_p0  ;;  %p496_p8 = scmp.ne.s32.totalorder %s879_s0, %s495_s8 }
  0x19   : > { %p502_p4 = scmp.lt.u32.totalorder %s495_s8, %s879_s0 }
  0x1a   : > { %p497_p9 = pneg %p732_p7 }
  0x1c   : > { %p498_p10 = pnand %p497_p9, %p496_p8 }
  0x1e   : > { %p499_p2 = pneg %p498_p10 }
  0x20   : > { %p504_p5 = pnand %p502_p4, %p499_p2 }
  0x22   : > { %507 = shalt.err (!%p504_p5)
}
  0x23   : > { %s629_s19 = smov [#allocation2]   ;;  %s508_s27 = scalar_lea.vmem %s143_s29, 16 }
  0x24   : > { %437 = dma.hbm_to_smem (!%p732_p7), %s879_s0, 64, %s629_s19, [#allocation5]  }
  0x25   : > { %p509_p0 = scmp.ne.s32.totalorder %s143_s29, %s508_s27  ;;  %p516_p11 = scmp.lt.s32.totalorder %s143_s29, %s143_s29 }
  0x26   : > { %p517_p8 = scmp.lt.s32.totalorder %s508_s27, %s508_s27 }
  0x27   : > { %p511_p1 = pnand %p509_p0, %p497_p9 }
  0x28   : > { %p518_p10 = por %p517_p8, %p516_p11 }
  0x29   : > { %p512_p12 = pneg %p511_p1 }
  0x2b   : > { %p519_p6 = pnand %p518_p10, %p512_p12 }
  0x2d   : > { %522 = shalt.err (!%p519_p6)
}
  0x2e   : > { %s630_s28 = smov [#allocation7]   ;;  %s394_s6 = sshll.u32 %s153_s5, 5 }
  0x2f   : > { %440 = dma.vmem_to_smem (!%p732_p7), %s143_s29, 16, %s630_s28, [#allocation6]  }
  0x30   : > { %s395_s7 = sshll.u32 %s627_s15, 7  ;;  %s157_s11 = scalar_lea.vmem [#allocation8], %s394_s6 }
  0x31   : > { %s765_s10 = scalar_lea.hbm %s881_s2, %s395_s7  ;;  %s163_s17 = sshll.u32 %s157_s11, 4  ;;  %s767_s17 = int_to_ptr.vmem [resolvable:$true] %s163_s17 }
  0x32   : > { %s769_s30 = scalar_lea.sflag [#allocation3], %s153_s5  ;;  %s523_s19 = scalar_lea.hbm %s765_s10, 512 }
  0x33   : > { %p524_p6 = scmp.ne.s32.totalorder %s765_s10, %s523_s19  ;;  %p525_p11 = pneg %p738_p3 }
  0x34   : > { %s528_s22 = scalar_lea.hbm %s881_s2, 1024  ;;  %p529_p7 = scmp.lt.u32.totalorder %s765_s10, %s881_s2 }
  0x35   : > { %p526_p12 = pnand %p525_p11, %p524_p6  ;;  %p530_p9 = scmp.lt.u32.totalorder %s528_s22, %s523_s19 }
  0x36   : > { %p532_p4 = scmp.lt.u32.totalorder %s523_s19, %s765_s10 }
  0x37   : > { %p527_p1 = pneg %p526_p12  ;;  %p531_p2 = por %p530_p9, %p529_p7 }
  0x39   : > { %p533_p5 = por %p532_p4, %p531_p2 }
  0x3b   : > { %p534_p0 = pnand %p533_p5, %p527_p1 }
  0x3d   : > { %537 = shalt.err (!%p534_p0)
}
  0x3e   : > { %s538_s5 = scalar_lea.vmem %s767_s17, 512  ;;  %s631_s6 = smov [#allocation8]  }
  0x3f   : > { %p539_p8 = scmp.ne.s32.totalorder %s767_s17, %s538_s5  ;;  %s543_s7 = sshll.u32 %s631_s6, 4  ;;  %s544_s7 = int_to_ptr.vmem [resolvable:$false] %s543_s7 }
  0x40   : > { %s545_s8 = scalar_lea.vmem %s544_s7, 1024  ;;  %p546_p12 = scmp.lt.s32.totalorder %s767_s17, %s544_s7 }
  0x41   : > { %p541_p10 = pnand %p539_p8, %p525_p11  ;;  %p547_p7 = scmp.lt.s32.totalorder %s545_s8, %s538_s5 }
  0x43   : > { %p542_p6 = pneg %p541_p10  ;;  %p548_p9 = por %p547_p7, %p546_p12 }
  0x45   : > { %p549_p2 = pnand %p548_p9, %p542_p6 }
  0x47   : > { %552 = shalt.err (!%p549_p2)
}
  0x48   : > { %s632_s9 = smov 256   ;;  %s633_s11 = smov 128  }
  0x49   : > { %s634_s19 = smov 8   ;;  %175 = sbr.rel (%p719_p13) target bundleno = 130 (0x82), region = 32 }
  0x4a   : > { %444 = dma.hbm_to_vmem [thread:$0]  (!%p738_p3), %s765_s10, 512, %s767_s17, %s769_s30, %s632_s9, %s633_s11, %s634_s19  }
  0x4b   : > { %p894_p11 = scmp.eq.s32.totalorder (!%p719_p13), %s680_s16, 0 }
  0x50   : > { %598 = dma.done.wait (%p894_p11), [#allocation5], 64   ;;  %p895_p1 = pmov %p894_p11 }
  0x52   : > { %600 = vsyncadd (%p895_p1), [#allocation5], 4294967232  ;;  %p896_p4 = pmov %p895_p1 }
  0x53   : > { %p897_p5 = pmov %p895_p1 }
  0x54   : > { %602 = dma.done.wait (%p896_p4), [#allocation6], 16  }
  0x55   : > { %604 = vsyncadd (%p897_p5), [#allocation6], 4294967280  ;;  %s808_s29 = sand.u32 1, %s619_s13   ;;  %p898_p13 = scmp.ne.s32.totalorder %s887_s23, 0 }
  0x56   : > { %s399_s26 = sshll.u32 %s808_s29, 5  ;;  %s186_s4 = scalar_lea.sflag [#allocation3], %s808_s29 }
  0x57   : > { %s189_s10 = scalar_lea.vmem [#allocation8], %s399_s26 }
  0x58   : > { %606 = dma.done.wait (%p898_p13), %s186_s4, 512  }
  0x59   : > { %608 = vsyncadd (%p898_p13), %s186_s4, 4294966784 }
  0x5a   : > { %194 = sfence }
  0x5b   : > { %s220_s17 = sld [smem:[#allocation2]]  ;;  %s403_s20 = sld [smem:[#allocation2 + $0x1]]  ;;  %v213_v0 = vld [vmem:[%s189_s10] sm:$0xff]  ;;  %v400_v1 = vld [vmem:[%s189_s10 + $0x8] sm:$0xff]  ;;  %v401_v2 = vld [vmem:[%s189_s10 + $0x10] sm:$0xff] }
  0x5c   : > { %s223_s30 = sld [smem:[#allocation7]]  ;;  %s404_s22 = sld [smem:[#allocation2 + $0x2]]  ;;  %v402_v4 = vld [vmem:[%s189_s10 + $0x18] sm:$0xff] }
  0x5d   : > { %s405_s27 = sld [smem:[#allocation2 + $0x3]]  ;;  %s406_s28 = sld [smem:[#allocation2 + $0x80]] }
  0x5e   : > { %s816_s5 = sld [smem:[#allocation7 + $0x1]]  ;;  %s409_s7 = sld [smem:[#allocation2 + $0x82]] }
  0x5f   : > { %s408_s6 = sld [smem:[#allocation2 + $0x81]]  ;;  %s410_s8 = sld [smem:[#allocation2 + $0x83]] }
  0x60   : > { %s412_s23 = sld [smem:[#allocation2 + $0x100]]  ;;  %s818_s9 = sld [smem:[#allocation7 + $0x2]] }
  0x61   : > { %v221_v3 = vstv %s220_s17  ;;  %v227_v7 = vstv %s403_s20  ;;  %s414_s11 = sld [smem:[#allocation2 + $0x101]]  ;;  %s820_s19 = sld [smem:[#allocation2 + $0x102]] }
  0x62   : > { %v222_v5 = vmul.f32 %v221_v3, %v213_v0  ;;  %v224_v6 = vstv %s223_s30  ;;  %v228_v8 = vmul.f32 %v400_v1, %v227_v7  ;;  %v231_v9 = vstv %s404_s22  ;;  %s822_s26 = sld [smem:[#allocation2 + $0x103]]  ;;  %s421_s4 = smul.u32 24, %s808_s29 }
  0x63   : > { %v232_v11 = vmul.f32 %v401_v2, %v231_v9  ;;  %v235_v12 = vstv %s405_s27  ;;  %v240_v14 = vstv %s406_s28  ;;  %s418_s30 = sshll.u32 %s680_s16, 7  ;;  %s280_s28 = scalar_lea.sflag [#allocation4], %s808_s29 }
  0x64   : > { %v225_v10 = vadd.f32 %v224_v6, %v222_v5  ;;  %v236_v13 = vmul.f32 %v402_v4, %v235_v12  ;;  %v241_v16 = vmul.f32 %v240_v14, %v213_v0  ;;  %v243_v17 = vstv %s816_s5  ;;  %s212_s10 = scalar_lea.vmem [#allocation9], %s421_s4  ;;  %s835_s27 = scalar_lea.hbm %s882_s3, %s418_s30 }
  0x65   : > { %v246_v18 = vstv %s408_s6  ;;  %v250_v20 = vstv %s409_s7  ;;  %v254_v21 = vstv %s410_s8  ;;  %s292_s17 = sshll.u32 %s212_s10, 4  ;;  %p899_p0 = scmp.ne.s32.totalorder %s888_s24, 0  ;;  %s830_s17 = int_to_ptr.vmem [resolvable:$true] %s292_s17 }
  0x66   : > { %v229_v15 = vadd.f32 %v228_v8, %v225_v10  ;;  %v247_v19 = vmul.f32 %v400_v1, %v246_v18  ;;  %v244_v23 = vadd.f32 %v243_v17, %v241_v16  ;;  %v251_v24 = vmul.f32 %v401_v2, %v250_v20  ;;  %s553_s5 = scalar_lea.vmem %s830_s17, 384  ;;  %s635_s16 = smov [#allocation9]  }
  0x67   : > { %v255_v25 = vmul.f32 %v402_v4, %v254_v21  ;;  %v260_v26 = vstv %s412_s23  ;;  %v263_v27 = vstv %s818_s9  ;;  %v266_v28 = vstv %s414_s11  ;;  %p554_p3 = scmp.ne.s32.totalorder %s830_s17, %s553_s5  ;;  %s557_s6 = sshll.u32 %s635_s16, 4  ;;  %s558_s6 = int_to_ptr.vmem [resolvable:$false] %s557_s6 }
  0x68   : > { %v233_v22 = vadd.f32 %v232_v11, %v229_v15  ;;  %v270_v29 = vstv %s820_s19  ;;  %v248_v31 = vadd.f32 %v247_v19, %v244_v23  ;;  %v261_v32 = vmul.f32 %v260_v26, %v213_v0  ;;  %s559_s7 = scalar_lea.vmem %s558_s6, 768  ;;  %p560_p6 = scmp.lt.s32.totalorder %s830_s17, %s558_s6 }
  0x69   : > { %v267_v33 = vmul.f32 %v400_v1, %v266_v28  ;;  %v274_v34 = vstv %s822_s26  ;;  %v271_v37 = vmul.f32 %v401_v2, %v270_v29  ;;  %p555_p8 = pnand %p554_p3, %p899_p0  ;;  %p561_p12 = scmp.lt.s32.totalorder %s559_s7, %s553_s5 }
  0x6a   : > { %v237_v30 = vadd.f32 %v236_v13, %v233_v22  ;;  %v252_v35 = vadd.f32 %v251_v24, %v248_v31  ;;  %v264_v36 = vadd.f32 %v263_v27, %v261_v32  ;;  %v275_v40 = vmul.f32 %v402_v4, %v274_v34 }
  0x6b   : > { %p556_p10 = pneg %p555_p8  ;;  %p562_p7 = por %p561_p12, %p560_p6 }
  0x6c   : > { %238 = vst [vmem:[%s212_s10] sm:$0xff] %v237_v30  ;;  %v256_v38 = vadd.f32 %v255_v25, %v252_v35  ;;  %v268_v39 = vadd.f32 %v267_v33, %v264_v36 }
  0x6d   : > { %p563_p9 = pnand %p562_p7, %p556_p10 }
  0x6e   : > { %411 = vst [vmem:[%s212_s10 + $0x8] sm:$0xff] %v256_v38  ;;  %v272_v41 = vadd.f32 %v271_v37, %v268_v39 }
  0x70   : > { %v276_v42 = vadd.f32 %v275_v40, %v272_v41 }
  0x72   : > { %417 = vst [vmem:[%s212_s10 + $0x10] sm:$0xff] %v276_v42 }
  0x73   : > { %566 = shalt.err (!%p563_p9)
}
  0x74   : > { %s567_s8 = scalar_lea.hbm %s835_s27, 384  ;;  %s571_s11 = scalar_lea.hbm %s882_s3, 768 }
  0x75   : > { %p568_p2 = scmp.ne.s32.totalorder %s835_s27, %s567_s8  ;;  %p572_p4 = scmp.lt.u32.totalorder %s835_s27, %s882_s3 }
  0x76   : > { %p573_p5 = scmp.lt.u32.totalorder %s571_s11, %s567_s8  ;;  %p575_p3 = scmp.lt.u32.totalorder %s567_s8, %s835_s27 }
  0x77   : > { %p569_p11 = pnand %p568_p2, %p899_p0 }
  0x78   : > { %p574_p13 = por %p573_p5, %p572_p4 }
  0x79   : > { %p570_p1 = pneg %p569_p11 }
  0x7a   : > { %p576_p8 = por %p575_p3, %p574_p13 }
  0x7c   : > { %p577_p10 = pnand %p576_p8, %p570_p1 }
  0x7e   : > { %580 = shalt.err (!%p577_p10)
}
  0x7f   : > { %s636_s4 = smov 128   ;;  %s637_s10 = smov 256  }
  0x80   : > { %s638_s30 = smov 8  }
  0x81   : > { %432 = dma.vmem_to_hbm [thread:$0]  (%p899_p0), %s830_s17, 384, %s835_s27, %s280_s28, %s636_s4, %s637_s10, %s638_s30  }
  0x82 PF: > { %s307_s20 = sand.u32 1, %s615_s12   ;;  %p900_p6 = scmp.ne.s32.totalorder %s889_s25, 0 }
  0x83   : > { %p901_p12 = scmp.ge.s32.totalorder %s627_s15, 2  ;;  %s308_s22 = scalar_lea.sflag [#allocation4], %s307_s20 }
  0x85   : > { %p446_p7 = pnand %p901_p12, %p900_p6 }
  0x87   : > { %610 = dma.done.wait (!%p446_p7), %s308_s22, 384  }
  0x88   : > { %612 = vsyncadd (!%p446_p7), %s308_s22, 4294966912  ;;  %p18_p9 = scmp.ge.s32.totalorder %s684_s18, 4   ;;  %s902_s12 = smov %s619_s13 }
  0x89   : > { %s903_s13 = smov %s623_s14  ;;  %s904_s14 = smov %s696_s21 }
  0x8a   : > { %s905_s15 = smov %s684_s18  ;;  %20 = sbr.rel (!%p18_p9) target bundleno = 7 (0x7), region = 92 }
  0x91   :  { %313 = vsyncpa [#allocation3], 1 }
  0x92   :  { %315 = vsyncpa [#allocation3 + $0x1], 1 }
  0x93   :  { %316 = vsyncpa [#allocation4], 1 }
  0x94   :  { %318 = vsyncpa [#allocation4 + $0x1], 1 }
  0x95   :  { %319 = vsyncpa [#allocation5], 1 }
  0x96   :  { %321 = vsyncpa [#allocation5 + $0x1], 1 }
  0x97   :  { %322 = vsyncpa [#allocation6], 1 }
  0x98   :  { %324 = vsyncpa [#allocation6 + $0x1], 1 }

</bundles_post_ra>
